<compile_context>
chip_gen: v7x
topology: tpu7x:2x2x1
jax: 0.10.0
libtpu: 0.0.40
codegen_flags: <defaults>
</compile_context>

<pallas_src>
import functools

import numpy as np
import jax
import jax.numpy as jnp
from jax import lax
from jax.experimental import pallas as pl
from jax.experimental.pallas import tpu as pltpu


# VMEM budgets: keep kernel-resident bytes well under v7x's 64 MiB physical VMEM
# (v5e/v6e have 128 MiB).  The scoped limit is raised explicitly on each call.
_VMEM_LIMIT = 48 * 1024 * 1024
_MM_VMEM_BUDGET = 20 * 1024 * 1024
_RNN_VMEM_BUDGET = 24 * 1024 * 1024

_GATE_PERM = (0, 1, 3, 2)   # PyTorch gate order (i, f, g, o) -> kernel order (i, f, o, g)


# ----------------------------------------------------------------------------
# Small trace-time helpers
# ----------------------------------------------------------------------------
def _round_up(x, m):
    return ((x + m - 1) // m) * m


def _tile_candidates(n, cands):
    out = [c for c in cands if n % c == 0]
    if not out:
        # largest multiple-of-8 divisor <= 512 (keeps sublane alignment), else full dim
        d = next((d for d in range(min(n, 512), 7, -1)
                  if n % d == 0 and d % 8 == 0), n)
        out = [d]
    return out


def _choose_mm_tiles(M, K, N, x_bytes, w_bytes, o_bytes, budget=_MM_VMEM_BUDGET):
    """Largest (tm, tn, tk) whose double-buffered blocks fit the VMEM budget."""
    tms = _tile_candidates(M, (512, 256, 128))
    tns = _tile_candidates(N, (512, 256, 128))
    tks = _tile_candidates(K, (2048, 1024, 512, 256, 128))

    def vmem(tm, tn, tk):
        return (2 * (tm * tk * x_bytes + tk * tn * w_bytes)   # double-buffered inputs
                + 2 * tm * tn * o_bytes                       # double-buffered output
                + tm * tn * 4 + 2 * tn * 4)                   # f32 accumulator + bias

    for tm in tms:
        for tn in tns:
            for tk in tks:
                if vmem(tm, tn, tk) <= budget:
                    return tm, tn, tk
    return tms[-1], tns[-1], tks[-1]


def _choose_batch_tile(bp, cap=128):
    """Largest multiple-of-8 divisor of Bp, capped (enables v7x batch-tile split)."""
    best, d = 8, 8
    while d <= min(bp, cap):
        if bp % d == 0:
            best = d
        d += 8
    return best


def _choose_chunk(t, bt, hp, act_bytes=2, budget=_RNN_VMEM_BUDGET, cap=16):
    """Largest divisor of T (<= cap) whose recurrence working set fits the budget."""
    whh = 2 * hp * 4 * hp * act_bytes       # W_hh^T, double-buffered (grid-invariant)
    states = 8 * bt * hp * 4                # h0/c0 in + hT/cT out, double-buffered, f32
    best = 1
    for c in range(1, min(t, cap) + 1):
        if t % c:
            continue
        gx = 2 * c * bt * 4 * hp * act_bytes
        out = 2 * c * bt * hp * act_bytes
        if whh + states + gx + out <= budget:
            best = c
    return best


# ----------------------------------------------------------------------------
# Weight packing (plain XLA glue, once per call, off the recurrent path)
# ----------------------------------------------------------------------------
def _pack_gate_weight(w, hidden, hp, d_in, dp):
    """[4H, Din] (PyTorch layout) -> [Dp, 4Hp] bf16, gate order (i,f,o,g), zero padded."""
    w4 = w.reshape(4, hidden, d_in)[jnp.array(_GATE_PERM)]
    w4 = jnp.pad(w4, ((0, 0), (0, hp - hidden), (0, dp - d_in)))
    return jnp.transpose(w4.reshape(4 * hp, dp)).astype(jnp.bfloat16)


def _pack_gate_bias(b_ih, b_hh, hidden, hp):
    b = (b_ih + b_hh).reshape(4, hidden)[jnp.array(_GATE_PERM)]
    b = jnp.pad(b, ((0, 0), (0, hp - hidden)))
    return b.reshape(1, 4 * hp).astype(jnp.float32)


# ----------------------------------------------------------------------------
# Tiled matmul + bias kernel: out = x @ w + b  (bf16 operands, f32 accumulation).
# Used for the hoisted per-layer input projection and the final FC.
# ----------------------------------------------------------------------------
def _matmul_bias_kernel(x_ref, w_ref, b_ref, o_ref, acc_ref):
    k = pl.program_id(2)

    @pl.when(k == 0)
    def _():
        acc_ref[...] = jnp.zeros_like(acc_ref)

    acc_ref[...] += jnp.dot(x_ref[...], w_ref[...],
                            preferred_element_type=jnp.float32)

    @pl.when(k == pl.num_programs(2) - 1)
    def _():
        o_ref[...] = (acc_ref[...] + b_ref[...]).astype(o_ref.dtype)


def matmul_bias(x2d, w_t, b_row, out_dtype=jnp.float32):
    """x2d: [M, K], w_t: [K, N], b_row: [1, N] -> [M, N] of out_dtype."""
    M, K = x2d.shape
    N = w_t.shape[1]
    x_bytes = np.dtype(x2d.dtype).itemsize
    w_bytes = np.dtype(w_t.dtype).itemsize
    o_bytes = np.dtype(out_dtype).itemsize
    tm, tn, tk = _choose_mm_tiles(M, K, N, x_bytes, w_bytes, o_bytes)
    gm, gn, gk = M // tm, N // tn, K // tk

    # Grid order: the larger operand is the one fetched from HBM exactly once.
    stream_x_once = M * K * x_bytes >= K * N * w_bytes
    if stream_x_once:
        grid = (gm, gn, gk)
        x_map = lambda i, j, k: (i, k)
        w_map = lambda i, j, k: (k, j)
        b_map = lambda i, j, k: (0, j)
        o_map = lambda i, j, k: (i, j)
    else:
        grid = (gn, gm, gk)
        x_map = lambda j, i, k: (i, k)
        w_map = lambda j, i, k: (k, j)
        b_map = lambda j, i, k: (0, j)
        o_map = lambda j, i, k: (i, j)

    return pl.pallas_call(
        _matmul_bias_kernel,
        out_shape=jax.ShapeDtypeStruct((M, N), out_dtype),
        grid_spec=pltpu.PrefetchScalarGridSpec(
            num_scalar_prefetch=0,
            grid=grid,
            in_specs=[
                pl.BlockSpec((tm, tk), x_map),
                pl.BlockSpec((tk, tn), w_map),
                pl.BlockSpec((1, tn), b_map),
            ],
            out_specs=pl.BlockSpec((tm, tn), o_map),
            scratch_shapes=[pltpu.VMEM((tm, tn), jnp.float32)],
        ),
        compiler_params=pltpu.CompilerParams(
            dimension_semantics=("parallel", "parallel", "arbitrary"),
            vmem_limit_bytes=_VMEM_LIMIT),
    )(x2d, w_t, b_row)


# ----------------------------------------------------------------------------
# LSTM recurrence kernel.  gx = x @ W_ih^T + (b_ih + b_hh) is precomputed
# (time-major [T, Bp, 4Hp], bf16); only h @ W_hh^T remains per timestep.
# grid = (batch tiles ["parallel"], time chunks ["arbitrary"]); the h/c state is
# carried in the constant-index hT/cT output blocks (VMEM-resident per batch tile).
# Gate order inside 4Hp: (i, f, o, g) so one sigmoid covers a contiguous [.,3Hp] slab.
# ----------------------------------------------------------------------------
def _lstm_recurrence_kernel(gx_ref, h0_ref, c0_ref, whh_ref,
                            out_ref, hT_ref, cT_ref, *, chunk, hidden):
    tc = pl.program_id(1)                      # time-chunk axis (sequential)

    @pl.when(tc == 0)
    def _():
        hT_ref[...] = h0_ref[...]
        cT_ref[...] = c0_ref[...]

    def step(t, carry):
        h, c = carry                           # f32 [bt, Hp]
        gates = gx_ref[t].astype(jnp.float32) + jnp.dot(
            h.astype(jnp.bfloat16), whh_ref[...],
            preferred_element_type=jnp.float32)          # [bt, 4Hp] f32
        sig = jax.nn.sigmoid(gates[:, :3 * hidden])      # i, f, o in one slab
        i_g = sig[:, 0 * hidden:1 * hidden]
        f_g = sig[:, 1 * hidden:2 * hidden]
        o_g = sig[:, 2 * hidden:3 * hidden]
        g_g = jnp.tanh(gates[:, 3 * hidden:4 * hidden])
        c_new = f_g * c + i_g * g_g
        h_new = o_g * jnp.tanh(c_new)
        out_ref[t] = h_new.astype(out_ref.dtype)
        return (h_new, c_new)

    unroll = True if chunk <= 8 else 4         # bound vreg pressure at large chunks
    h_fin, c_fin = lax.fori_loop(0, chunk, step,
                                 (hT_ref[...], cT_ref[...]), unroll=unroll)
    hT_ref[...] = h_fin
    cT_ref[...] = c_fin


def lstm_recurrence(gx_tm, h0, c0, whh_t, out_dtype=jnp.bfloat16):
    """gx_tm: [T, Bp, 4Hp] bf16; h0/c0: [Bp, Hp] f32; whh_t: [Hp, 4Hp] bf16."""
    T, Bp, G = gx_tm.shape
    Hp = h0.shape[-1]
    bt = _choose_batch_tile(Bp)
    chunk = _choose_chunk(T, bt, Hp)
    kernel = functools.partial(_lstm_recurrence_kernel, chunk=chunk, hidden=Hp)
    out, hT, cT = pl.pallas_call(
        kernel,
        out_shape=(jax.ShapeDtypeStruct((T, Bp, Hp), out_dtype),
                   jax.ShapeDtypeStruct((Bp, Hp), jnp.float32),
                   jax.ShapeDtypeStruct((Bp, Hp), jnp.float32)),
        grid_spec=pltpu.PrefetchScalarGridSpec(
            num_scalar_prefetch=0,
            grid=(Bp // bt, T // chunk),       # (batch tiles, time chunks)
            in_specs=[
                pl.BlockSpec((chunk, bt, G), lambda b, c: (c, b, 0)),   # gx chunk
                pl.BlockSpec((bt, Hp), lambda b, c: (b, 0)),            # h0
                pl.BlockSpec((bt, Hp), lambda b, c: (b, 0)),            # c0
                # TODO(synk): pipeline_mode=pl.Buffered(1) on the three grid-invariant
                # blocks above/below would halve their VMEM residency at very large H.
                pl.BlockSpec((Hp, G), lambda b, c: (0, 0)),             # W_hh^T (resident)
            ],
            out_specs=[
                pl.BlockSpec((chunk, bt, Hp), lambda b, c: (c, b, 0)),  # per-step h
                pl.BlockSpec((bt, Hp), lambda b, c: (b, 0)),            # h_T (state carry)
                pl.BlockSpec((bt, Hp), lambda b, c: (b, 0)),            # c_T (state carry)
            ],
        ),
        compiler_params=pltpu.CompilerParams(
            # batch tiles independent (v7x can split them across TCs); time sequential.
            dimension_semantics=("parallel", "arbitrary"),
            vmem_limit_bytes=_VMEM_LIMIT),
    )(gx_tm, h0, c0, whh_t)
    return out, hT, cT


# ----------------------------------------------------------------------------
# Full forward (mirrors LSTMGenerator.forward, batch_first=True)
# ----------------------------------------------------------------------------
def lstm_generator_forward(params, characters, hc_states=None):
    # characters: [B, T] int32
    emb = params["embed"][characters]                    # [B, T, E] gather (JAX glue)
    B, T, E = emb.shape
    L = len(params["lstm"])
    H = params["lstm"][0]["w_hh"].shape[1]
    V = params["fc_w"].shape[0]

    Bp = _round_up(B, 8)                                  # sublane tile
    Hp = _round_up(H, 128)                                # lane tile
    Ep = _round_up(E, 128)
    Vp = _round_up(V, 128)

    # Time-major, zero-padded, bf16 activations.
    x_tm = jnp.transpose(emb, (1, 0, 2))
    x_tm = jnp.pad(x_tm, ((0, 0), (0, Bp - B), (0, Ep - E))).astype(jnp.bfloat16)

    if hc_states is None:
        h0 = jnp.zeros((L, B, H), jnp.float32)
        c0 = jnp.zeros((L, B, H), jnp.float32)
    else:
        h0, c0 = hc_states
    h0p = jnp.pad(h0.astype(jnp.float32), ((0, 0), (0, Bp - B), (0, Hp - H)))
    c0p = jnp.pad(c0.astype(jnp.float32), ((0, 0), (0, Bp - B), (0, Hp - H)))

    h_fin, c_fin = [], []
    for l in range(L):
        p = params["lstm"][l]
        d_in, dp = (E, Ep) if l == 0 else (H, Hp)
        wih_t = _pack_gate_weight(p["w_ih"], H, Hp, d_in, dp)       # [dp, 4Hp] bf16
        whh_t = _pack_gate_weight(p["w_hh"], H, Hp, H, Hp)          # [Hp, 4Hp] bf16
        bias = _pack_gate_bias(p["b_ih"], p["b_hh"], H, Hp)         # [1, 4Hp] f32

        # Hoisted input projection: one big [T*Bp, dp] x [dp, 4Hp] MXU matmul.
        gx = matmul_bias(x_tm.reshape(T * Bp, dp), wih_t, bias,
                         out_dtype=jnp.bfloat16).reshape(T, Bp, 4 * Hp)

        # Sequential recurrence (only h @ W_hh^T per step).
        x_tm, hT, cT = lstm_recurrence(gx, h0p[l], c0p[l], whh_t)
        h_fin.append(hT)
        c_fin.append(cT)

    # FC on the time-major activations; padded vocab keeps the writeback lane-dense.
    fc_w_t = jnp.pad(params["fc_w"], ((0, Vp - V), (0, Hp - H))).T.astype(jnp.bfloat16)
    fc_b = jnp.pad(params["fc_b"], (0, Vp - V)).reshape(1, Vp).astype(jnp.float32)
    logits_tm = matmul_bias(x_tm.reshape(T * Bp, Hp), fc_w_t, fc_b,
                            out_dtype=jnp.float32).reshape(T, Bp, Vp)
    # TODO(synk): fold this (T,B)->(B,T) swap into the FC kernel's out_spec writeback
    # to avoid one extra HBM round-trip of the logits.
    logits = jnp.transpose(logits_tm, (1, 0, 2))[:B, :, :V]
    h_n = jnp.stack(h_fin)[:, :B, :H]
    c_n = jnp.stack(c_fin)[:, :B, :H]
    return logits, (h_n, c_n)


# ----------------------------------------------------------------------------
# Pure-JAX f32 reference (for correctness check)
# ----------------------------------------------------------------------------
def ref_forward(params, characters, hc_states=None):
    emb = params["embed"][characters]
    B, T, E = emb.shape
    L = len(params["lstm"])
    H = params["lstm"][0]["w_hh"].shape[1]
    if hc_states is None:
        h0 = jnp.zeros((L, B, H), jnp.float32)
        c0 = jnp.zeros((L, B, H), jnp.float32)
    else:
        h0, c0 = hc_states

    x = jnp.transpose(emb, (1, 0, 2))            # [T, B, E]
    h_fin, c_fin = [], []
    for l in range(L):
        p = params["lstm"][l]

        def step(carry, xt, p=p):
            hh, cc = carry
            gates = xt @ p["w_ih"].T + hh @ p["w_hh"].T + p["b_ih"] + p["b_hh"]
            i, f, g, o = jnp.split(gates, 4, axis=-1)
            cn = jax.nn.sigmoid(f) * cc + jax.nn.sigmoid(i) * jnp.tanh(g)
            hn = jax.nn.sigmoid(o) * jnp.tanh(cn)
            return (hn, cn), hn

        (hT, cT), ys = jax.lax.scan(step, (h0[l], c0[l]), x)
        x = ys
        h_fin.append(hT)
        c_fin.append(cT)

    out_bth = jnp.transpose(x, (1, 0, 2))
    logits = out_bth @ params["fc_w"].T + params["fc_b"]
    return logits, (jnp.stack(h_fin), jnp.stack(c_fin))


# ----------------------------------------------------------------------------
# Deterministic parameter init (PyTorch-style uniform(-1/sqrt(H), 1/sqrt(H)))
# ----------------------------------------------------------------------------
def init_params(key, vocab, embed, hidden, num_layers):
    k = 1.0 / jnp.sqrt(hidden)
    keys = jax.random.split(key, 3 + 4 * num_layers)
    params = {
        "embed": jax.random.normal(keys[0], (vocab, embed), jnp.float32),
        "fc_w": jax.random.uniform(keys[1], (vocab, hidden), jnp.float32, -k, k),
        "fc_b": jax.random.uniform(keys[2], (vocab,), jnp.float32, -k, k),
        "lstm": [],
    }
    for l in range(num_layers):
        in_size = embed if l == 0 else hidden
        kk = keys[3 + 4 * l: 3 + 4 * (l + 1)]
        params["lstm"].append({
            "w_ih": jax.random.uniform(kk[0], (4 * hidden, in_size), jnp.float32, -k, k),
            "w_hh": jax.random.uniform(kk[1], (4 * hidden, hidden), jnp.float32, -k, k),
            "b_ih": jax.random.uniform(kk[2], (4 * hidden,), jnp.float32, -k, k),
            "b_hh": jax.random.uniform(kk[3], (4 * hidden,), jnp.float32, -k, k),
        })
    return params


if __name__ == "__main__":
    VOCAB, EMBED, HIDDEN, LAYERS = 16, 32, 32, 2
    B, T = 2, 8

    key = jax.random.PRNGKey(0)
    pkey, ckey = jax.random.split(key)
    params = init_params(pkey, VOCAB, EMBED, HIDDEN, LAYERS)
    characters = jax.random.randint(ckey, (B, T), 0, VOCAB, dtype=jnp.int32)

    logits, (h_n, c_n) = lstm_generator_forward(params, characters)
    jax.block_until_ready(logits)
    jax.block_until_ready(h_n)
    jax.block_until_ready(c_n)

    ref_logits, (ref_h, ref_c) = ref_forward(params, characters)

    assert logits.shape == (B, T, VOCAB)
    assert h_n.shape == (LAYERS, B, HIDDEN) and c_n.shape == (LAYERS, B, HIDDEN)
    # bf16 MXU operands -> compare against the f32 reference at bf16-level tolerance.
    assert jnp.allclose(logits, ref_logits, rtol=5e-2, atol=5e-2)
    assert jnp.allclose(h_n, ref_h, rtol=5e-2, atol=5e-2)
    assert jnp.allclose(c_n, ref_c, rtol=5e-2, atol=5e-2)

    print("KERNEL_OK")
</pallas_src>

<mosaic_0001>
module attributes {stable_mosaic.version = 11 : i64} {
  func.func @_matmul_bias_kernel(%arg0: i32, %arg1: i32, %arg2: i32, %arg3: memref<64x128xbf16, #tpu.memory_space<vmem>>, %arg4: memref<128x512xbf16, #tpu.memory_space<vmem>>, %arg5: memref<1x512xf32, #tpu.memory_space<vmem>>, %arg6: memref<64x512xbf16, #tpu.memory_space<vmem>>, %arg7: memref<64x512xf32, #tpu.memory_space<vmem>>) attributes {dimension_semantics = [#tpu.dimension_semantics<parallel>, #tpu.dimension_semantics<parallel>, #tpu.dimension_semantics<arbitrary>], iteration_bounds = array<i64: 1, 1, 1>, scalar_prefetch = 0 : i64, scratch_operands = 1 : i64, tpu.core_type = #tpu.core_type<tc>, window_params = [{transform_indices = @transform_0, window_bounds = array<i64: 64, 128>}, {transform_indices = @transform_1, window_bounds = array<i64: 128, 512>}, {transform_indices = @transform_2, window_bounds = array<i64: 1, 512>}, {transform_indices = @transform_3, window_bounds = array<i64: 64, 512>}]} {
    %c0_i32 = arith.constant 0 : i32
    %0 = arith.cmpi eq, %arg2, %c0_i32 : i32
    %1 = arith.extui %0 : i1 to i32
    %c0_i32_0 = arith.constant 0 : i32
    %2 = arith.cmpi ne, %1, %c0_i32_0 : i32
    scf.if %2 {
      %cst_10 = arith.constant 0.000000e+00 : f32
      %12 = vector.broadcast %cst_10 : f32 to vector<64x512xf32>
      %c0_11 = arith.constant 0 : index
      %c0_12 = arith.constant 0 : index
      %13 = vector.load %arg7[%c0_11, %c0_12] : memref<64x512xf32, #tpu.memory_space<vmem>>, vector<64x512xf32>
      tpu.vector_store %arg7[%c0_11, %c0_12], %12 {strides = array<i32>} : memref<64x512xf32, #tpu.memory_space<vmem>>, vector<64x512xf32>,
    } else {
    }
    %c0 = arith.constant 0 : index
    %c0_1 = arith.constant 0 : index
    %3 = vector.load %arg7[%c0, %c0_1] : memref<64x512xf32, #tpu.memory_space<vmem>>, vector<64x512xf32>
    %c0_2 = arith.constant 0 : index
    %c0_3 = arith.constant 0 : index
    %4 = vector.load %arg3[%c0_2, %c0_3] : memref<64x128xbf16, #tpu.memory_space<vmem>>, vector<64x128xbf16>
    %c0_4 = arith.constant 0 : index
    %c0_5 = arith.constant 0 : index
    %5 = vector.load %arg4[%c0_4, %c0_5] : memref<128x512xbf16, #tpu.memory_space<vmem>>, vector<128x512xbf16>
    %cst = arith.constant dense<0.000000e+00> : vector<64x512xf32>
    %6 = tpu.matmul %4, %5, %cst {dimension_numbers = #tpu.dot_dimension_numbers<[1], [0], [0], [1], [0, 0, 1, 1], [], []>} : vector<64x128xbf16>, vector<128x512xbf16>, vector<64x512xf32> -> vector<64x512xf32>
    %7 = arith.addf %3, %6 : vector<64x512xf32>
    %c0_6 = arith.constant 0 : index
    %c0_7 = arith.constant 0 : index
    %8 = vector.load %arg7[%c0_6, %c0_7] : memref<64x512xf32, #tpu.memory_space<vmem>>, vector<64x512xf32>
    tpu.vector_store %arg7[%c0_6, %c0_7], %7 {strides = array<i32>} : memref<64x512xf32, #tpu.memory_space<vmem>>, vector<64x512xf32>,
    %c0_i32_8 = arith.constant 0 : i32
    %9 = arith.cmpi eq, %arg2, %c0_i32_8 : i32
    %10 = arith.extui %9 : i1 to i32
    %c0_i32_9 = arith.constant 0 : i32
    %11 = arith.cmpi ne, %10, %c0_i32_9 : i32
    scf.if %11 {
      %c0_10 = arith.constant 0 : index
      %c0_11 = arith.constant 0 : index
      %12 = vector.load %arg7[%c0_10, %c0_11] : memref<64x512xf32, #tpu.memory_space<vmem>>, vector<64x512xf32>
      %c0_12 = arith.constant 0 : index
      %c0_13 = arith.constant 0 : index
      %13 = vector.load %arg5[%c0_12, %c0_13] : memref<1x512xf32, #tpu.memory_space<vmem>>, vector<1x512xf32>
      %14 = vector.broadcast %13 : vector<1x512xf32> to vector<64x512xf32>
      %15 = arith.addf %12, %14 : vector<64x512xf32>
      %16 = arith.truncf %15 : vector<64x512xf32> to vector<64x512xbf16>
      %c0_14 = arith.constant 0 : index
      %c0_15 = arith.constant 0 : index
      %17 = vector.load %arg6[%c0_14, %c0_15] : memref<64x512xbf16, #tpu.memory_space<vmem>>, vector<64x512xbf16>
      tpu.vector_store %arg6[%c0_14, %c0_15], %16 {strides = array<i32>} : memref<64x512xbf16, #tpu.memory_space<vmem>>, vector<64x512xbf16>,
    } else {
    }
    return
  }
  func.func @transform_0(%arg0: i32, %arg1: i32, %arg2: i32) -> (i32, i32) {
    %c0_i32 = arith.constant 0 : i32
    return %arg1, %arg2 : i32, i32
  }
  func.func @transform_1(%arg0: i32, %arg1: i32, %arg2: i32) -> (i32, i32) {
    %c0_i32 = arith.constant 0 : i32
    return %arg2, %arg0 : i32, i32
  }
  func.func @transform_2(%arg0: i32, %arg1: i32, %arg2: i32) -> (i32, i32) {
    %c0_i32 = arith.constant 0 : i32
    %c0_i32_0 = arith.constant 0 : i32
    return %c0_i32, %arg0 : i32, i32
  }
  func.func @transform_3(%arg0: i32, %arg1: i32, %arg2: i32) -> (i32, i32) {
    %c0_i32 = arith.constant 0 : i32
    return %arg1, %arg0 : i32, i32
  }
}

</mosaic_0001>

<bundles_post_ra>
// kernel: tpu_custom_call.1
= control target key start
LH: loop header
LB: loop body
LE: loop exit
PB: predicated region body
PF: predicated region fallthrough
CT: control target
= control target key end

     0   :  { %8 = vsyncpa [#allocation4], 0  ;;  %s1086_s0 = inlined_call_operand.hbm [shape: bf16[64,128], index: 0, kind: input, shape index: {}]   ;;  %s1087_s1 = inlined_call_operand.hbm [shape: bf16[128,512], index: 1, kind: input, shape index: {}]   ;;  %s1088_s2 = inlined_call_operand.vmem [shape: f32[1,512], index: 2, kind: input, shape index: {}]   ;;  %s1089_s3 = inlined_call_operand.hbm [shape: bf16[64,512], index: 3, kind: output, shape index: {}]  }
   0x1   :  { %9 = vsyncpa [#allocation7], 0 }
   0x2   :  { %10 = vsyncpa [#allocation5], 0  ;;  %s965_s12 = smov [#allocation3]   ;;  %s893_s16 = scalar_lea.hbm %s1086_s0, 512 }
   0x3   :  { %s16_s13 = sshll.u32 %s965_s12, 4  ;;  %p894_p0 = scmp.ne.s32.totalorder %s1086_s0, %s893_s16  ;;  %s17_s13 = int_to_ptr.vmem [resolvable:$true] %s16_s13 }
   0x4   :  { %p897_p1 = scmp.lt.u32.totalorder %s893_s16, %s1086_s0 }
   0x6   :  { %p899_p2 = pnand %p897_p1, %p894_p0 }
   0x8   :  { %902 = shalt.err (!%p899_p2)
}
   0x9   :  { %s903_s21 = scalar_lea.vmem %s17_s13, 512  ;;  %p908_p4 = scmp.lt.s32.totalorder %s17_s13, %s17_s13 }
   0xa   :  { %p904_p3 = scmp.ne.s32.totalorder %s17_s13, %s903_s21  ;;  %p909_p5 = scmp.lt.s32.totalorder %s903_s21, %s903_s21 }
   0xc   :  { %p910_p6 = por %p909_p5, %p908_p4 }
   0xe   :  { %p911_p7 = pnand %p910_p6, %p904_p3 }
  0x10   :  { %914 = shalt.err (!%p911_p7)
}
  0x11   :  { %s966_s22 = smov 64   ;;  %s967_s23 = smov 4  }
  0x12   :  { %22 = dma.hbm_to_vmem [thread:$0]  %s1086_s0, 512, %s17_s13, [#allocation4], %s966_s22, %s966_s22, %s967_s23  }
  0x13   :  { %s968_s26 = smov [#allocation6]   ;;  %s915_s30 = scalar_lea.hbm %s1087_s1, 4096 }
  0x14   :  { %s28_s27 = sshll.u32 %s968_s26, 4  ;;  %p916_p8 = scmp.ne.s32.totalorder %s1087_s1, %s915_s30  ;;  %s29_s27 = int_to_ptr.vmem [resolvable:$true] %s28_s27 }
  0x15   :  { %p919_p9 = scmp.lt.u32.totalorder %s915_s30, %s1087_s1 }
  0x17   :  { %p921_p10 = pnand %p919_p9, %p916_p8 }
  0x19   :  { %924 = shalt.err (!%p921_p10)
}
  0x1a   :  { %s925_s8 = scalar_lea.vmem %s29_s27, 4096  ;;  %p930_p12 = scmp.lt.s32.totalorder %s29_s27, %s29_s27 }
  0x1b   :  { %p926_p11 = scmp.ne.s32.totalorder %s29_s27, %s925_s8  ;;  %p931_p13 = scmp.lt.s32.totalorder %s925_s8, %s925_s8 }
  0x1d   :  { %p932_p0 = por %p931_p13, %p930_p12 }
  0x1f   :  { %p933_p1 = pnand %p932_p0, %p926_p11 }
  0x21   :  { %936 = shalt.err (!%p933_p1)
}
  0x22   :  { %s969_s0 = smov 256   ;;  %s970_s9 = smov 16  }
  0x23   :  { %34 = dma.hbm_to_vmem [thread:$0]  %s1087_s1, 4096, %s29_s27, [#allocation7], %s969_s0, %s969_s0, %s970_s9  }
  0x24   :  { %959 = dma.done.wait [#allocation4], 512  }
  0x25   :  { %960 = vsyncadd [#allocation4], 4294966784 }
  0x26   :  { %961 = dma.done.wait [#allocation7], 4096  }
  0x27   :  { %962 = vsyncadd [#allocation7], 4294963200  ;;  %v971_v0 = vmov 0   ;;  %v841_v1 = vld [vmem:[#allocation6 + $0x4] ss:$16 sps:$4 sm:$0xff]   ;;  %v890_v34 = vld [vmem:[#allocation3 + $0x8] sm:$0xff]   ;;  %v583_v37 = vlaneseq }
  0x28   :  { %368 = vmatprep.mubr.bf16.mxu0 %v971_v0  ;;  %441 = vmatprep.mubr.bf16.mxu1 %v971_v0  ;;  %v843_v2 = vld [vmem:[#allocation6 + $0xc] ss:$16 sps:$4 sm:$0xff]   ;;  %v845_v3 = vld [vmem:[#allocation6] ss:$16 sps:$4 sm:$0xff]   ;;  %v846_v4 = vld [vmem:[#allocation6 + $0x8] ss:$16 sps:$4 sm:$0xff]  }
  0x29   :  { %336 = vmatprep.subr.bf16.mxu0 %v841_v1  ;;  %409 = vmatprep.subr.bf16.mxu1 %v843_v2  ;;  %v847_v5 = vld [vmem:[#allocation6 + $0x24] ss:$16 sps:$4 sm:$0xff]   ;;  %v849_v6 = vld [vmem:[#allocation6 + $0x2c] ss:$16 sps:$4 sm:$0xff]   ;;  %v851_v7 = vld [vmem:[#allocation6 + $0x20] ss:$16 sps:$4 sm:$0xff]  }
  0x2a   :  { %337 = vmatpush1.bf16.msra.mxu0 %v845_v3  ;;  %410 = vmatpush1.bf16.msra.mxu1 %v846_v4  ;;  %v852_v8 = vld [vmem:[#allocation6 + $0x28] ss:$16 sps:$4 sm:$0xff]   ;;  %v853_v9 = vld [vmem:[#allocation6 + $0x44] ss:$16 sps:$4 sm:$0xff]   ;;  %v855_v10 = vld [vmem:[#allocation6 + $0x4c] ss:$16 sps:$4 sm:$0xff]  }
  0x2b   :  { %338 = vmatprep.subr.bf16.mxu0 %v847_v5  ;;  %411 = vmatprep.subr.bf16.mxu1 %v849_v6  ;;  %v857_v11 = vld [vmem:[#allocation6 + $0x40] ss:$16 sps:$4 sm:$0xff]   ;;  %v858_v12 = vld [vmem:[#allocation6 + $0x48] ss:$16 sps:$4 sm:$0xff]   ;;  %v859_v13 = vld [vmem:[#allocation6 + $0x64] ss:$16 sps:$4 sm:$0xff]  }
  0x2c   :  { %v861_v14 = vld [vmem:[#allocation6 + $0x6c] ss:$16 sps:$4 sm:$0xff]   ;;  %v863_v15 = vld [vmem:[#allocation6 + $0x60] ss:$16 sps:$4 sm:$0xff]   ;;  %v864_v16 = vld [vmem:[#allocation6 + $0x68] ss:$16 sps:$4 sm:$0xff]  }
  0x2d   :  { %v865_v17 = vld [vmem:[#allocation6 + $0x84] ss:$16 sps:$4 sm:$0xff]   ;;  %v867_v18 = vld [vmem:[#allocation6 + $0x8c] ss:$16 sps:$4 sm:$0xff]   ;;  %v869_v19 = vld [vmem:[#allocation6 + $0x80] ss:$16 sps:$4 sm:$0xff]  }
  0x2e   :  { %339 = vmatpush1.bf16.msra.mxu0 %v851_v7  ;;  %412 = vmatpush1.bf16.msra.mxu1 %v852_v8  ;;  %v870_v20 = vld [vmem:[#allocation6 + $0x88] ss:$16 sps:$4 sm:$0xff]   ;;  %v871_v21 = vld [vmem:[#allocation6 + $0xa4] ss:$16 sps:$4 sm:$0xff]   ;;  %v873_v22 = vld [vmem:[#allocation6 + $0xac] ss:$16 sps:$4 sm:$0xff]  }
  0x2f   :  { %340 = vmatprep.subr.bf16.mxu0 %v853_v9  ;;  %413 = vmatprep.subr.bf16.mxu1 %v855_v10  ;;  %v875_v23 = vld [vmem:[#allocation6 + $0xa0] ss:$16 sps:$4 sm:$0xff]   ;;  %v876_v24 = vld [vmem:[#allocation6 + $0xa8] ss:$16 sps:$4 sm:$0xff]   ;;  %v877_v25 = vld [vmem:[#allocation6 + $0xc4] ss:$16 sps:$4 sm:$0xff]  }
  0x30   :  { %v879_v26 = vld [vmem:[#allocation6 + $0xcc] ss:$16 sps:$4 sm:$0xff]   ;;  %v881_v27 = vld [vmem:[#allocation6 + $0xc0] ss:$16 sps:$4 sm:$0xff]   ;;  %v882_v28 = vld [vmem:[#allocation6 + $0xc8] ss:$16 sps:$4 sm:$0xff]  }
  0x31   :  { %v883_v29 = vld [vmem:[#allocation6 + $0xe4] ss:$16 sps:$4 sm:$0xff]   ;;  %v885_v30 = vld [vmem:[#allocation6 + $0xec] ss:$16 sps:$4 sm:$0xff]   ;;  %v887_v31 = vld [vmem:[#allocation6 + $0xe0] ss:$16 sps:$4 sm:$0xff]  }
  0x32   :  { %341 = vmatpush1.bf16.msra.mxu0 %v857_v11  ;;  %414 = vmatpush1.bf16.msra.mxu1 %v858_v12  ;;  %v888_v32 = vld [vmem:[#allocation6 + $0xe8] ss:$16 sps:$4 sm:$0xff]   ;;  %v889_v33 = vld [vmem:[#allocation3] sm:$0xff]   ;;  %v891_v35 = vld [vmem:[#allocation3 + $0x10] sm:$0xff]   ;;  %v584_v38 = vshrl.u32 %v583_v37, 7 }
  0x33   :  { %342 = vmatprep.subr.bf16.mxu0 %v859_v13  ;;  %415 = vmatprep.subr.bf16.mxu1 %v861_v14  ;;  %v892_v36 = vld [vmem:[#allocation3 + $0x18] sm:$0xff]   ;;  %v581_v41 = vld [vmem:[%s1088_s2] sm:$0xf]  ;;  %s972_s2 = smov [#allocation8]  }
  0x34   :  { %v585_v39 = vsub.s32 0, %v584_v38  ;;  %v593_v40 = vsub.s32 2, %v584_v38  ;;  %v589_v42 = vsub.s32 1, %v584_v38  ;;  %v597_v43 = vsub.s32 3, %v584_v38  ;;  %s752_s13 = sshll.u32 %s972_s2, 4  ;;  %s753_s13 = int_to_ptr.vmem [resolvable:$true] %s752_s13 }
  0x35   :  { %s937_s14 = scalar_lea.vmem %s753_s13, 2048  ;;  %p942_p3 = scmp.lt.s32.totalorder %s753_s13, %s753_s13 }
  0x36   :  { %343 = vmatpush1.bf16.msra.mxu0 %v863_v15  ;;  %416 = vmatpush1.bf16.msra.mxu1 %v864_v16  ;;  %v1031_v44 = vrot.slane %v581_v41, %v585_v39  ;;  %v1033_v45 = vrot.slane %v581_v41, %v593_v40  ;;  %v1035_v46 = vrot.slane %v581_v41, %v589_v42  ;;  %p938_p2 = scmp.ne.s32.totalorder %s753_s13, %s937_s14  ;;  %p943_p4 = scmp.lt.s32.totalorder %s937_s14, %s937_s14 }
  0x37   :  { %344 = vmatprep.subr.bf16.mxu0 %v865_v17  ;;  %417 = vmatprep.subr.bf16.mxu1 %v867_v18  ;;  %v1037_v47 = vrot.slane %v581_v41, %v597_v43 }
  0x38   :  { %p944_p5 = por %p943_p4, %p942_p3 }
  0x3a   :  { %345 = vmatpush1.bf16.msra.mxu0 %v869_v19  ;;  %418 = vmatpush1.bf16.msra.mxu1 %v870_v20  ;;  %p945_p6 = pnand %p944_p5, %p938_p2 }
  0x3b   :  { %346 = vmatprep.subr.bf16.mxu0 %v871_v21  ;;  %419 = vmatprep.subr.bf16.mxu1 %v873_v22 }
  0x3e   :  { %347 = vmatpush1.bf16.msra.mxu0 %v875_v23  ;;  %420 = vmatpush1.bf16.msra.mxu1 %v876_v24 }
  0x3f   :  { %348 = vmatprep.subr.bf16.mxu0 %v877_v25  ;;  %421 = vmatprep.subr.bf16.mxu1 %v879_v26 }
  0x42   :  { %349 = vmatpush1.bf16.msra.mxu0 %v881_v27  ;;  %422 = vmatpush1.bf16.msra.mxu1 %v882_v28 }
  0x43   :  { %350 = vmatprep.subr.bf16.mxu0 %v883_v29  ;;  %423 = vmatprep.subr.bf16.mxu1 %v885_v30 }
  0x46   :  { %351 = vmatpush1.bf16.msra.mxu0 %v887_v31  ;;  %424 = vmatpush1.bf16.msra.mxu1 %v888_v32 }
  0x49   :  { %369 = vmatmul.mubr.bf16.vlgmr.msra.gmra.mrb[0].mxu0 %v889_v33  ;;  %442 = vmatmul.mubr.bf16.vlgmr.msra.gmra.mrb[0].mxu1 %v889_v33 }
  0x4a   :  { %378 = vmatprep.mubr.bf16.mxu0 %v971_v0  ;;  %451 = vmatprep.mubr.bf16.mxu1 %v971_v0 }
  0x51   :  { %379 = vmatmul.mubr.bf16.gmra.mrb[4].mxu0 %v890_v34  ;;  %452 = vmatmul.mubr.bf16.gmra.mrb[4].mxu1 %v890_v34 }
  0x52   :  { %388 = vmatprep.mubr.bf16.mxu0 %v971_v0  ;;  %461 = vmatprep.mubr.bf16.mxu1 %v971_v0 }
  0x59   :  { %389 = vmatmul.mubr.bf16.gmra.mrb[8].mxu0 %v891_v35  ;;  %462 = vmatmul.mubr.bf16.gmra.mrb[8].mxu1 %v891_v35 }
  0x5a   :  { %398 = vmatprep.mubr.bf16.mxu0 %v971_v0  ;;  %471 = vmatprep.mubr.bf16.mxu1 %v971_v0 }
  0x61   :  { %399 = vmatmul.mubr.bf16.gmra.mrb[12].mxu0 %v892_v36  ;;  %472 = vmatmul.mubr.bf16.gmra.mrb[12].mxu1 %v892_v36 }
 0x11c   :  { %v370_v48 = vpop.f32.mrb[0].mxu0  ;;  %v443_v49 = vpop.f32.mrb[0].mxu1 }
 0x11d   :  { %v603_v50 = vadd.f32 %v1031_v44, %v370_v48  ;;  %v605_v51 = vadd.f32 %v1033_v45, %v443_v49  ;;  %v372_v52 = vpop.f32.mrb[1].mxu0  ;;  %v445_v53 = vpop.f32.mrb[1].mxu1 }
 0x11e   :  { %v604_v54 = vadd.f32 %v1035_v46, %v372_v52  ;;  %v606_v55 = vadd.f32 %v1037_v47, %v445_v53  ;;  %v374_v56 = vpop.f32.mrb[2].mxu0  ;;  %v447_v57 = vpop.f32.mrb[2].mxu1 }
 0x11f   :  { %v607_v58 = vadd.f32 %v1031_v44, %v374_v56  ;;  %v609_v59 = vadd.f32 %v1033_v45, %v447_v57  ;;  %v376_v60 = vpop.f32.mrb[3].mxu0  ;;  %v449_v61 = vpop.f32.mrb[3].mxu1 }
 0x120   :  { %v817_v62 = vpack.c.bf16 %v604_v54, %v603_v50  ;;  %v818_v63 = vpack.c.bf16 %v606_v55, %v605_v51  ;;  %v608_v0 = vadd.f32 %v1035_v46, %v376_v60  ;;  %v610_v1 = vadd.f32 %v1037_v47, %v449_v61 }
 0x122   :  { %731 = vst [vmem:[#allocation8] sm:$0xff] %v817_v62  ;;  %732 = vst [vmem:[#allocation8 + $0x8] sm:$0xff] %v818_v63  ;;  %v819_v2 = vpack.c.bf16 %v608_v0, %v607_v58  ;;  %v820_v3 = vpack.c.bf16 %v610_v1, %v609_v59 }
 0x124   :  { %733 = vst [vmem:[#allocation8 + $0x10] sm:$0xff] %v819_v2  ;;  %734 = vst [vmem:[#allocation8 + $0x18] sm:$0xff] %v820_v3  ;;  %v380_v4 = vpop.f32.mrb[4].mxu0  ;;  %v453_v5 = vpop.f32.mrb[4].mxu1 }
 0x125   :  { %v611_v6 = vadd.f32 %v1031_v44, %v380_v4  ;;  %v613_v7 = vadd.f32 %v1033_v45, %v453_v5  ;;  %v382_v8 = vpop.f32.mrb[5].mxu0  ;;  %v455_v9 = vpop.f32.mrb[5].mxu1 }
 0x126   :  { %v612_v10 = vadd.f32 %v1035_v46, %v382_v8  ;;  %v614_v11 = vadd.f32 %v1037_v47, %v455_v9  ;;  %v384_v12 = vpop.f32.mrb[6].mxu0  ;;  %v457_v13 = vpop.f32.mrb[6].mxu1 }
 0x127   :  { %v615_v14 = vadd.f32 %v1031_v44, %v384_v12  ;;  %v617_v15 = vadd.f32 %v1033_v45, %v457_v13  ;;  %v386_v16 = vpop.f32.mrb[7].mxu0  ;;  %v459_v17 = vpop.f32.mrb[7].mxu1 }
 0x128   :  { %v821_v18 = vpack.c.bf16 %v612_v10, %v611_v6  ;;  %v822_v19 = vpack.c.bf16 %v614_v11, %v613_v7  ;;  %v616_v20 = vadd.f32 %v1035_v46, %v386_v16  ;;  %v618_v21 = vadd.f32 %v1037_v47, %v459_v17 }
 0x12a   :  { %735 = vst [vmem:[#allocation8 + $0x20] sm:$0xff] %v821_v18  ;;  %736 = vst [vmem:[#allocation8 + $0x28] sm:$0xff] %v822_v19  ;;  %v823_v22 = vpack.c.bf16 %v616_v20, %v615_v14  ;;  %v824_v23 = vpack.c.bf16 %v618_v21, %v617_v15 }
 0x12c   :  { %737 = vst [vmem:[#allocation8 + $0x30] sm:$0xff] %v823_v22  ;;  %738 = vst [vmem:[#allocation8 + $0x38] sm:$0xff] %v824_v23  ;;  %v390_v24 = vpop.f32.mrb[8].mxu0  ;;  %v463_v25 = vpop.f32.mrb[8].mxu1 }
 0x12d   :  { %v619_v26 = vadd.f32 %v1031_v44, %v390_v24  ;;  %v621_v27 = vadd.f32 %v1033_v45, %v463_v25  ;;  %v392_v28 = vpop.f32.mrb[9].mxu0  ;;  %v465_v29 = vpop.f32.mrb[9].mxu1 }
 0x12e   :  { %v620_v30 = vadd.f32 %v1035_v46, %v392_v28  ;;  %v622_v31 = vadd.f32 %v1037_v47, %v465_v29  ;;  %v394_v32 = vpop.f32.mrb[10].mxu0  ;;  %v467_v33 = vpop.f32.mrb[10].mxu1 }
 0x12f   :  { %v623_v34 = vadd.f32 %v1031_v44, %v394_v32  ;;  %v625_v35 = vadd.f32 %v1033_v45, %v467_v33  ;;  %v396_v36 = vpop.f32.mrb[11].mxu0  ;;  %v469_v37 = vpop.f32.mrb[11].mxu1 }
 0x130   :  { %v825_v38 = vpack.c.bf16 %v620_v30, %v619_v26  ;;  %v826_v39 = vpack.c.bf16 %v622_v31, %v621_v27  ;;  %v624_v40 = vadd.f32 %v1035_v46, %v396_v36  ;;  %v626_v41 = vadd.f32 %v1037_v47, %v469_v37 }
 0x132   :  { %739 = vst [vmem:[#allocation8 + $0x40] sm:$0xff] %v825_v38  ;;  %740 = vst [vmem:[#allocation8 + $0x48] sm:$0xff] %v826_v39  ;;  %v827_v42 = vpack.c.bf16 %v624_v40, %v623_v34  ;;  %v828_v43 = vpack.c.bf16 %v626_v41, %v625_v35 }
 0x134   :  { %741 = vst [vmem:[#allocation8 + $0x50] sm:$0xff] %v827_v42  ;;  %742 = vst [vmem:[#allocation8 + $0x58] sm:$0xff] %v828_v43  ;;  %v400_v48 = vpop.f32.mrb[12].mxu0  ;;  %v473_v49 = vpop.f32.mrb[12].mxu1 }
 0x135   :  { %v627_v50 = vadd.f32 %v1031_v44, %v400_v48  ;;  %v629_v51 = vadd.f32 %v1033_v45, %v473_v49  ;;  %v402_v52 = vpop.f32.mrb[13].mxu0  ;;  %v475_v53 = vpop.f32.mrb[13].mxu1 }
 0x136   :  { %v628_v54 = vadd.f32 %v1035_v46, %v402_v52  ;;  %v630_v55 = vadd.f32 %v1037_v47, %v475_v53  ;;  %v404_v56 = vpop.f32.mrb[14].mxu0  ;;  %v477_v57 = vpop.f32.mrb[14].mxu1 }
 0x137   :  { %v631_v58 = vadd.f32 %v1031_v44, %v404_v56  ;;  %v633_v59 = vadd.f32 %v1033_v45, %v477_v57  ;;  %v406_v60 = vpop.f32.mrb[15].mxu0  ;;  %v479_v61 = vpop.f32.mrb[15].mxu1 }
 0x138   :  { %v829_v62 = vpack.c.bf16 %v628_v54, %v627_v50  ;;  %v830_v63 = vpack.c.bf16 %v630_v55, %v629_v51  ;;  %v632_v0 = vadd.f32 %v1035_v46, %v406_v60  ;;  %v634_v1 = vadd.f32 %v1037_v47, %v479_v61 }
 0x13a   :  { %743 = vst [vmem:[#allocation8 + $0x60] sm:$0xff] %v829_v62  ;;  %744 = vst [vmem:[#allocation8 + $0x68] sm:$0xff] %v830_v63  ;;  %v831_v2 = vpack.c.bf16 %v632_v0, %v631_v58  ;;  %v832_v3 = vpack.c.bf16 %v634_v1, %v633_v59 }
 0x13c   :  { %745 = vst [vmem:[#allocation8 + $0x70] sm:$0xff] %v831_v2  ;;  %746 = vst [vmem:[#allocation8 + $0x78] sm:$0xff] %v832_v3 }
 0x13d   :  { %948 = shalt.err (!%p945_p6)
}
 0x13e   :  { %s949_s17 = scalar_lea.hbm %s1089_s3, 2048 }
 0x13f   :  { %p950_p7 = scmp.ne.s32.totalorder %s1089_s3, %s949_s17  ;;  %p953_p8 = scmp.lt.u32.totalorder %s949_s17, %s1089_s3 }
 0x141   :  { %p955_p9 = pnand %p953_p8, %p950_p7 }
 0x143   :  { %958 = shalt.err (!%p955_p9)
}
 0x144   :  { %758 = dma.vmem_to_hbm [thread:$0]  %s753_s13, 2048, %s1089_s3, [#allocation5], %s969_s0, %s969_s0, %s970_s9  }
 0x145   :  { %963 = dma.done.wait [#allocation5], 2048  }
 0x146   :  { %964 = vsyncadd [#allocation5], 4294965248 }
 0x147   :  { %762 = vsyncpa [#allocation4], 1 }
 0x148   :  { %763 = vsyncpa [#allocation7], 1 }
 0x149   :  { %764 = vsyncpa [#allocation5], 1 }

</bundles_post_ra>
